<compile_context>
chip_gen: v5e
topology: v5e:2x2
jax: 0.10.0
libtpu: 0.0.40
codegen_flags: <defaults>
</compile_context>

<pallas_src>
import math

import jax
import jax.numpy as jnp
from jax import lax
from jax.experimental import pallas as pl
from jax.experimental.pallas import tpu as pltpu

KL_WEIGHT = 0.01
VARIANCE_WEIGHT = 0.1
HUBER_DELTA = 1.0
PRIOR_STD = 1.0

# Model configuration (small, consistent with EnhancedGNNv2 __init__)
HIDDEN = 32
LIGAND_DIM = 10
PROTEIN_DIM = 10
COMBINED_DIM = 128  # CrossModalAttention output dim (fixed at 128 in the module)

# The 7 BayesianLinear layers inside EnhancedGNNv2 (use_bayesian=True):
#   ligand encoder:  (hidden, ligand_dim), (hidden//2, hidden)
#   protein encoder: (hidden, protein_dim), (hidden//2, hidden)
#   predictor:       (hidden, 128), (hidden//2, hidden), (1, hidden//2)
BAYESIAN_SHAPES = [
    (HIDDEN, LIGAND_DIM), (HIDDEN // 2, HIDDEN),
    (HIDDEN, PROTEIN_DIM), (HIDDEN // 2, HIDDEN),
    (HIDDEN, COMBINED_DIM), (HIDDEN // 2, HIDDEN), (1, HIDDEN // 2),
]

# rho value whose per-element KL contribution is ~zero (sigma == prior_std == 1)
RHO_NEUTRAL = math.log(math.e - 1.0)

LANES = 128


# ---------------------------------------------------------------------------
# Fused Pallas kernel: KL + Huber + variance penalty + total, one call.
# ---------------------------------------------------------------------------
def _fused_loss_kernel(n_ref, mu_ref, rho_ref, pred_ref, targ_ref, out_ref):
    """All loss components in one pass.

    n_ref            : (1,) i32 SMEM scalar-prefetch -> number of valid elements
    mu_ref / rho_ref : (R, 128) f32 slabs of all Bayesian (mu, rho) params,
                       padded with (0, RHO_NEUTRAL) so padding contributes ~0 KL.
    pred_ref/targ_ref: (1, Bp) f32 lane-major, zero-padded.
    out_ref          : (1, 128) f32 -> lanes [total, reg, kl, var, pen, 0...]
    """
    n = n_ref[0]
    nf = n.astype(jnp.float32)
    inv_n = 1.0 / nf

    # ---- KL( N(mu, sigma) || N(0, prior_std) ) summed over all params -------
    mu = mu_ref[...]
    rho = rho_ref[...]
    # numerically stable softplus, |rho| form: one exp + one log1p per element
    sigma = jnp.maximum(rho, 0.0) + jnp.log1p(jnp.exp(-jnp.abs(rho)))
    if PRIOR_STD == 1.0:
        # fold the prior constants at trace time
        kl_elem = 0.5 * (mu * mu + sigma * sigma - 1.0) - jnp.log(sigma)
    else:
        inv_prior_sq = 1.0 / (PRIOR_STD * PRIOR_STD)
        kl_elem = (0.5 * ((mu * mu + sigma * sigma) * inv_prior_sq - 1.0)
                   - jnp.log(sigma * (1.0 / PRIOR_STD)))
    # row-first: VPU partial sums down the rows, one final cross-lane reduce
    kl = jnp.sum(jnp.sum(kl_elem, axis=0))

    # ---- Huber (mean) + unbiased variance over the valid prediction lanes ---
    p = pred_ref[...].astype(jnp.float32)
    t = targ_ref[...].astype(jnp.float32)
    lane = lax.broadcasted_iota(jnp.int32, p.shape, dimension=1)
    valid = lane < n

    e = p - t
    ae = jnp.abs(e)
    h = jnp.where(ae < HUBER_DELTA,
                  0.5 * e * e,
                  HUBER_DELTA * (ae - 0.5 * HUBER_DELTA))
    reg = jnp.sum(jnp.where(valid, h, 0.0)) * inv_n

    mean = jnp.sum(jnp.where(valid, p, 0.0)) * inv_n
    d = p - mean
    # torch.var default is unbiased (n-1); requires n >= 2 (torch gives nan at n==1).
    var = jnp.sum(jnp.where(valid, d * d, 0.0)) / (nf - 1.0)
    pen = jnp.exp(-var / 0.5)

    total = reg + KL_WEIGHT * kl + VARIANCE_WEIGHT * pen

    # ---- pack the 5 scalars into one lane-dense (1,128) unmasked store ------
    idx = lax.broadcasted_iota(jnp.int32, out_ref.shape, dimension=1)
    packed = (jnp.where(idx == 0, total, 0.0)
              + jnp.where(idx == 1, reg, 0.0)
              + jnp.where(idx == 2, kl, 0.0)
              + jnp.where(idx == 3, var, 0.0)
              + jnp.where(idx == 4, pen, 0.0))
    out_ref[...] = packed


# ---------------------------------------------------------------------------
# Wrappers (jitted; everything stays on device)
# ---------------------------------------------------------------------------
def _pad_lane_major(x):
    """Any-shape array -> zero-padded (1, ceil(numel/128)*128) f32 slab, n_valid."""
    flat = x.reshape(-1).astype(jnp.float32)
    n = flat.shape[0]
    pad = (-n) % LANES
    flat = jnp.pad(flat, (0, pad))          # single fusion, no concat chain
    return flat.reshape(1, -1), n


def _loss_core(n_arr, pred2d, targ2d, mu2d, rho2d):
    R, C = mu2d.shape
    Bp = pred2d.shape[1]

    out = pl.pallas_call(
        _fused_loss_kernel,
        out_shape=jax.ShapeDtypeStruct((1, LANES), jnp.float32),
        grid_spec=pltpu.PrefetchScalarGridSpec(
            num_scalar_prefetch=1,
            grid=(1,),
            in_specs=[pl.BlockSpec((R, C), lambda i, n: (0, 0)),
                      pl.BlockSpec((R, C), lambda i, n: (0, 0)),
                      pl.BlockSpec((1, Bp), lambda i, n: (0, 0)),
                      pl.BlockSpec((1, Bp), lambda i, n: (0, 0))],
            out_specs=pl.BlockSpec((1, LANES), lambda i, n: (0, 0)),
        ),
        compiler_params=pltpu.CompilerParams(
            dimension_semantics=("arbitrary",)),
    )(n_arr, mu2d, rho2d, pred2d, targ2d)

    total_loss = out[0, 0]
    loss_components = {
        "regression_loss": out[0, 1],
        "kl_loss": out[0, 2],
        "prediction_variance": out[0, 3],
        "variance_penalty": out[0, 4],
    }
    return total_loss, loss_components


# Pre-padded entry point: pad predictions/targets ONCE outside the training
# loop; `n_arr` is a (1,) int32 device array, so varying batch count at a fixed
# padded width does not recompile.
uncertainty_loss_padded = jax.jit(_loss_core)


@jax.jit
def uncertainty_loss(predictions, targets, mu2d, rho2d):
    """Returns (total_loss, loss_components) like UncertaintyLoss.forward.

    All returned values are device scalars (0-d jnp arrays) so the whole thing
    composes inside a jitted training step with no host sync.
    """
    if predictions.size != targets.size:
        raise ValueError(
            f"predictions ({predictions.size}) and targets ({targets.size}) "
            "must have the same number of elements")
    pred2d, n = _pad_lane_major(predictions)
    targ2d, _ = _pad_lane_major(targets)
    n_arr = jnp.full((1,), n, jnp.int32)
    return _loss_core(n_arr, pred2d, targ2d, mu2d, rho2d)


# ---------------------------------------------------------------------------
# Deterministic parameter construction (matches BayesianLinear.reset_parameters)
# ---------------------------------------------------------------------------
def _xavier_normal(key, out_f, in_f):
    std = math.sqrt(2.0 / (in_f + out_f))
    return std * jax.random.normal(key, (out_f, in_f), jnp.float32)


def pack_bayesian_params(key):
    """Flatten all (mu, rho) params of the 7 BayesianLinear layers into (R,128) slabs."""
    mus, rhos = [], []
    keys = jax.random.split(key, len(BAYESIAN_SHAPES))
    for k, (o, i) in zip(keys, BAYESIAN_SHAPES):
        # weight_mu: xavier_normal ; weight_rho: -3
        mus.append(_xavier_normal(k, o, i).reshape(-1))
        rhos.append(jnp.full((o * i,), -3.0, jnp.float32))
        # bias_mu: 0 ; bias_rho: -3
        mus.append(jnp.zeros((o,), jnp.float32))
        rhos.append(jnp.full((o,), -3.0, jnp.float32))
    mu = jnp.concatenate(mus)
    rho = jnp.concatenate(rhos)

    n = mu.shape[0]
    cols = LANES
    rows = -(-n // cols)
    rows = -(-rows // 8) * 8          # pad rows to a multiple of 8 (sublane)
    pad = rows * cols - n
    mu = jnp.concatenate([mu, jnp.zeros((pad,), jnp.float32)]).reshape(rows, cols)
    # neutral rho padding -> sigma ~= 1 -> ~zero KL contribution
    rho = jnp.concatenate(
        [rho, jnp.full((pad,), RHO_NEUTRAL, jnp.float32)]).reshape(rows, cols)
    return mu, rho


# ---------------------------------------------------------------------------
# TODO(synk): the EnhancedGNNv2 forward (Bayesian weight sampling, MHA, BatchNorm,
# MC dropout) is not implemented here — only the UncertaintyLoss.forward math;
# model.get_kl_divergence() is replicated from the packed (mu, rho) slabs.
# TODO(synk): no custom_vjp — this kernel is forward/eval only as written.
if __name__ == "__main__":
    key = jax.random.PRNGKey(0)
    k_pred, k_targ, k_param = jax.random.split(key, 3)

    B = 8
    predictions = jax.random.normal(k_pred, (B, 1), jnp.float32)
    targets = jax.random.normal(k_targ, (B, 1), jnp.float32)
    mu2d, rho2d = pack_bayesian_params(k_param)

    total_loss, components = uncertainty_loss(predictions, targets, mu2d, rho2d)
    jax.block_until_ready(total_loss)
    jax.block_until_ready(components["kl_loss"])

    print("KERNEL_OK")
</pallas_src>

<mosaic_0001>
module attributes {stable_mosaic.version = 11 : i64} {
  func.func @_fused_loss_kernel(%arg0: i32, %arg1: memref<1xi32, #tpu.memory_space<smem>>, %arg2: memref<56x128xf32, #tpu.memory_space<vmem>>, %arg3: memref<56x128xf32, #tpu.memory_space<vmem>>, %arg4: memref<1x128xf32, #tpu.memory_space<vmem>>, %arg5: memref<1x128xf32, #tpu.memory_space<vmem>>, %arg6: memref<1x128xf32, #tpu.memory_space<vmem>>) attributes {dimension_semantics = [#tpu.dimension_semantics<arbitrary>], iteration_bounds = array<i64: 1>, scalar_prefetch = 1 : i64, scratch_operands = 0 : i64, tpu.core_type = #tpu.core_type<tc>, window_params = [{pipeline_mode = #tpu.pipeline_mode<synchronous>, transform_indices = @transform_0, window_bounds = array<i64: 56, 128>}, {pipeline_mode = #tpu.pipeline_mode<synchronous>, transform_indices = @transform_1, window_bounds = array<i64: 56, 128>}, {pipeline_mode = #tpu.pipeline_mode<synchronous>, transform_indices = @transform_2, window_bounds = array<i64: 1, 128>}, {pipeline_mode = #tpu.pipeline_mode<synchronous>, transform_indices = @transform_3, window_bounds = array<i64: 1, 128>}, {pipeline_mode = #tpu.pipeline_mode<synchronous>, transform_indices = @transform_4, window_bounds = array<i64: 1, 128>}]} {
    %c0 = arith.constant 0 : index
    %0 = memref.load %arg1[%c0] : memref<1xi32, #tpu.memory_space<smem>>
    %1 = arith.sitofp %0 : i32 to f32
    %cst = arith.constant 1.000000e+00 : f32
    %2 = arith.divf %cst, %1 : f32
    %c0_0 = arith.constant 0 : index
    %c0_1 = arith.constant 0 : index
    %3 = vector.load %arg2[%c0_0, %c0_1] : memref<56x128xf32, #tpu.memory_space<vmem>>, vector<56x128xf32>
    %c0_2 = arith.constant 0 : index
    %c0_3 = arith.constant 0 : index
    %4 = vector.load %arg3[%c0_2, %c0_3] : memref<56x128xf32, #tpu.memory_space<vmem>>, vector<56x128xf32>
    %cst_4 = arith.constant 0.000000e+00 : f32
    %5 = vector.broadcast %cst_4 : f32 to vector<56x128xf32>
    %6 = arith.maximumf %4, %5 : vector<56x128xf32>
    %7 = math.absf %4 : vector<56x128xf32>
    %cst_5 = arith.constant 0.000000e+00 : f32
    %8 = vector.broadcast %cst_5 : f32 to vector<56x128xf32>
    %9 = arith.subf %8, %7 : vector<56x128xf32>
    %10 = math.exp %9 : vector<56x128xf32>
    %11 = math.log1p %10 : vector<56x128xf32>
    %12 = arith.addf %6, %11 : vector<56x128xf32>
    %13 = arith.mulf %3, %3 : vector<56x128xf32>
    %14 = arith.mulf %12, %12 : vector<56x128xf32>
    %15 = arith.addf %13, %14 : vector<56x128xf32>
    %cst_6 = arith.constant 1.000000e+00 : f32
    %16 = vector.broadcast %cst_6 : f32 to vector<56x128xf32>
    %17 = arith.subf %15, %16 : vector<56x128xf32>
    %cst_7 = arith.constant 5.000000e-01 : f32
    %18 = vector.broadcast %cst_7 : f32 to vector<56x128xf32>
    %19 = arith.mulf %18, %17 : vector<56x128xf32>
    %20 = math.log %12 : vector<56x128xf32>
    %21 = arith.subf %19, %20 : vector<56x128xf32>
    %cst_8 = arith.constant dense<0.000000e+00> : vector<128xf32>
    %22 = vector.multi_reduction <add>, %21, %cst_8 [0] : vector<56x128xf32> to vector<128xf32>
    %23 = vector.shape_cast %22 : vector<128xf32> to vector<1x128xf32>
    %cst_9 = arith.constant dense<0.000000e+00> : vector<1xf32>
    %24 = vector.multi_reduction <add>, %23, %cst_9 [1] : vector<1x128xf32> to vector<1xf32>
    %25 = vector.shape_cast %24 : vector<1xf32> to vector<1x1xf32>
    %26 = vector.extract %25[0, 0] : f32 from vector<1x1xf32>
    %c0_10 = arith.constant 0 : index
    %c0_11 = arith.constant 0 : index
    %27 = vector.load %arg4[%c0_10, %c0_11] : memref<1x128xf32, #tpu.memory_space<vmem>>, vector<1x128xf32>
    %c0_12 = arith.constant 0 : index
    %c0_13 = arith.constant 0 : index
    %28 = vector.load %arg5[%c0_12, %c0_13] : memref<1x128xf32, #tpu.memory_space<vmem>>, vector<1x128xf32>
    %29 = tpu.iota {dimensions = array<i32: 1>} : vector<1x128xi32>
    %30 = vector.broadcast %0 : i32 to vector<1x128xi32>
    %31 = arith.cmpi slt, %29, %30 : vector<1x128xi32>
    %32 = arith.subf %27, %28 : vector<1x128xf32>
    %33 = math.absf %32 : vector<1x128xf32>
    %cst_14 = arith.constant 1.000000e+00 : f32
    %34 = vector.broadcast %cst_14 : f32 to vector<1x128xf32>
    %35 = arith.cmpf olt, %33, %34 : vector<1x128xf32>
    %cst_15 = arith.constant 5.000000e-01 : f32
    %36 = vector.broadcast %cst_15 : f32 to vector<1x128xf32>
    %37 = arith.mulf %36, %32 : vector<1x128xf32>
    %38 = arith.mulf %37, %32 : vector<1x128xf32>
    %cst_16 = arith.constant 5.000000e-01 : f32
    %39 = vector.broadcast %cst_16 : f32 to vector<1x128xf32>
    %40 = arith.subf %33, %39 : vector<1x128xf32>
    %cst_17 = arith.constant 1.000000e+00 : f32
    %41 = vector.broadcast %cst_17 : f32 to vector<1x128xf32>
    %42 = arith.mulf %41, %40 : vector<1x128xf32>
    %43 = arith.select %35, %38, %42 : vector<1x128xi1>, vector<1x128xf32>
    %cst_18 = arith.constant 0.000000e+00 : f32
    %44 = vector.broadcast %cst_18 : f32 to vector<1x128xf32>
    %45 = arith.select %31, %43, %44 : vector<1x128xi1>, vector<1x128xf32>
    %46 = vector.shape_cast %45 : vector<1x128xf32> to vector<1x1x128xf32>
    %cst_19 = arith.constant dense<0.000000e+00> : vector<1xf32>
    %47 = vector.multi_reduction <add>, %46, %cst_19 [1, 2] : vector<1x1x128xf32> to vector<1xf32>
    %48 = vector.shape_cast %47 : vector<1xf32> to vector<1x1x1xf32>
    %49 = vector.extract %48[0, 0, 0] : f32 from vector<1x1x1xf32>
    %50 = arith.mulf %49, %2 : f32
    %cst_20 = arith.constant 0.000000e+00 : f32
    %51 = vector.broadcast %cst_20 : f32 to vector<1x128xf32>
    %52 = arith.select %31, %27, %51 : vector<1x128xi1>, vector<1x128xf32>
    %53 = vector.shape_cast %52 : vector<1x128xf32> to vector<1x1x128xf32>
    %cst_21 = arith.constant dense<0.000000e+00> : vector<1xf32>
    %54 = vector.multi_reduction <add>, %53, %cst_21 [1, 2] : vector<1x1x128xf32> to vector<1xf32>
    %55 = vector.shape_cast %54 : vector<1xf32> to vector<1x1x1xf32>
    %56 = vector.extract %55[0, 0, 0] : f32 from vector<1x1x1xf32>
    %57 = arith.mulf %56, %2 : f32
    %58 = vector.broadcast %57 : f32 to vector<1x128xf32>
    %59 = arith.subf %27, %58 : vector<1x128xf32>
    %60 = arith.mulf %59, %59 : vector<1x128xf32>
    %cst_22 = arith.constant 0.000000e+00 : f32
    %61 = vector.broadcast %cst_22 : f32 to vector<1x128xf32>
    %62 = arith.select %31, %60, %61 : vector<1x128xi1>, vector<1x128xf32>
    %63 = vector.shape_cast %62 : vector<1x128xf32> to vector<1x1x128xf32>
    %cst_23 = arith.constant dense<0.000000e+00> : vector<1xf32>
    %64 = vector.multi_reduction <add>, %63, %cst_23 [1, 2] : vector<1x1x128xf32> to vector<1xf32>
    %65 = vector.shape_cast %64 : vector<1xf32> to vector<1x1x1xf32>
    %66 = vector.extract %65[0, 0, 0] : f32 from vector<1x1x1xf32>
    %cst_24 = arith.constant 1.000000e+00 : f32
    %67 = arith.subf %1, %cst_24 : f32
    %68 = arith.divf %66, %67 : f32
    %cst_25 = arith.constant 0.000000e+00 : f32
    %69 = arith.subf %cst_25, %68 : f32
    %cst_26 = arith.constant 5.000000e-01 : f32
    %70 = arith.divf %69, %cst_26 : f32
    %71 = math.exp %70 : f32
    %cst_27 = arith.constant 0.00999999977 : f32
    %72 = arith.mulf %cst_27, %26 : f32
    %73 = arith.addf %50, %72 : f32
    %cst_28 = arith.constant 1.000000e-01 : f32
    %74 = arith.mulf %cst_28, %71 : f32
    %75 = arith.addf %73, %74 : f32
    %76 = tpu.iota {dimensions = array<i32: 1>} : vector<1x128xi32>
    %c0_i32 = arith.constant 0 : i32
    %77 = vector.broadcast %c0_i32 : i32 to vector<1x128xi32>
    %78 = arith.cmpi eq, %76, %77 : vector<1x128xi32>
    %cst_29 = arith.constant 0.000000e+00 : f32
    %79 = vector.broadcast %75 : f32 to vector<1x128xf32>
    %80 = vector.broadcast %cst_29 : f32 to vector<1x128xf32>
    %81 = arith.select %78, %79, %80 : vector<1x128xi1>, vector<1x128xf32>
    %c1_i32 = arith.constant 1 : i32
    %82 = vector.broadcast %c1_i32 : i32 to vector<1x128xi32>
    %83 = arith.cmpi eq, %76, %82 : vector<1x128xi32>
    %cst_30 = arith.constant 0.000000e+00 : f32
    %84 = vector.broadcast %50 : f32 to vector<1x128xf32>
    %85 = vector.broadcast %cst_30 : f32 to vector<1x128xf32>
    %86 = arith.select %83, %84, %85 : vector<1x128xi1>, vector<1x128xf32>
    %87 = arith.addf %81, %86 : vector<1x128xf32>
    %c2_i32 = arith.constant 2 : i32
    %88 = vector.broadcast %c2_i32 : i32 to vector<1x128xi32>
    %89 = arith.cmpi eq, %76, %88 : vector<1x128xi32>
    %cst_31 = arith.constant 0.000000e+00 : f32
    %90 = vector.broadcast %26 : f32 to vector<1x128xf32>
    %91 = vector.broadcast %cst_31 : f32 to vector<1x128xf32>
    %92 = arith.select %89, %90, %91 : vector<1x128xi1>, vector<1x128xf32>
    %93 = arith.addf %87, %92 : vector<1x128xf32>
    %c3_i32 = arith.constant 3 : i32
    %94 = vector.broadcast %c3_i32 : i32 to vector<1x128xi32>
    %95 = arith.cmpi eq, %76, %94 : vector<1x128xi32>
    %cst_32 = arith.constant 0.000000e+00 : f32
    %96 = vector.broadcast %68 : f32 to vector<1x128xf32>
    %97 = vector.broadcast %cst_32 : f32 to vector<1x128xf32>
    %98 = arith.select %95, %96, %97 : vector<1x128xi1>, vector<1x128xf32>
    %99 = arith.addf %93, %98 : vector<1x128xf32>
    %c4_i32 = arith.constant 4 : i32
    %100 = vector.broadcast %c4_i32 : i32 to vector<1x128xi32>
    %101 = arith.cmpi eq, %76, %100 : vector<1x128xi32>
    %cst_33 = arith.constant 0.000000e+00 : f32
    %102 = vector.broadcast %71 : f32 to vector<1x128xf32>
    %103 = vector.broadcast %cst_33 : f32 to vector<1x128xf32>
    %104 = arith.select %101, %102, %103 : vector<1x128xi1>, vector<1x128xf32>
    %105 = arith.addf %99, %104 : vector<1x128xf32>
    %c0_34 = arith.constant 0 : index
    %c0_35 = arith.constant 0 : index
    %106 = vector.load %arg6[%c0_34, %c0_35] : memref<1x128xf32, #tpu.memory_space<vmem>>, vector<1x128xf32>
    tpu.vector_store %arg6[%c0_34, %c0_35], %105 {strides = array<i32>} : memref<1x128xf32, #tpu.memory_space<vmem>>, vector<1x128xf32>,
    return
  }
  func.func @transform_0(%arg0: i32, %arg1: memref<1xi32, #tpu.memory_space<smem>>) -> (i32, i32) {
    %c0_i32 = arith.constant 0 : i32
    %c0_i32_0 = arith.constant 0 : i32
    %c0_i32_1 = arith.constant 0 : i32
    return %c0_i32, %c0_i32_0 : i32, i32
  }
  func.func @transform_1(%arg0: i32, %arg1: memref<1xi32, #tpu.memory_space<smem>>) -> (i32, i32) {
    %c0_i32 = arith.constant 0 : i32
    %c0_i32_0 = arith.constant 0 : i32
    %c0_i32_1 = arith.constant 0 : i32
    return %c0_i32, %c0_i32_0 : i32, i32
  }
  func.func @transform_2(%arg0: i32, %arg1: memref<1xi32, #tpu.memory_space<smem>>) -> (i32, i32) {
    %c0_i32 = arith.constant 0 : i32
    %c0_i32_0 = arith.constant 0 : i32
    %c0_i32_1 = arith.constant 0 : i32
    return %c0_i32, %c0_i32_0 : i32, i32
  }
  func.func @transform_3(%arg0: i32, %arg1: memref<1xi32, #tpu.memory_space<smem>>) -> (i32, i32) {
    %c0_i32 = arith.constant 0 : i32
    %c0_i32_0 = arith.constant 0 : i32
    %c0_i32_1 = arith.constant 0 : i32
    return %c0_i32, %c0_i32_0 : i32, i32
  }
  func.func @transform_4(%arg0: i32, %arg1: memref<1xi32, #tpu.memory_space<smem>>) -> (i32, i32) {
    %c0_i32 = arith.constant 0 : i32
    %c0_i32_0 = arith.constant 0 : i32
    %c0_i32_1 = arith.constant 0 : i32
    return %c0_i32, %c0_i32_0 : i32, i32
  }
}

</mosaic_0001>

<bundles_post_ra>
// kernel: uncertainty_loss.1
= control target key start
LH: loop header
LB: loop body
LE: loop exit
PB: predicated region body
PF: predicated region fallthrough
CT: control target
= control target key end

     0   :  { %11 = vsyncpa [#allocation5], 0  ;;  %s708_s0 = inlined_call_operand.<no memory space> [shape: s32[1], index: 0, kind: input, shape index: {}]   ;;  %s709_s1 = inlined_call_operand.hbm [shape: f32[56,128], index: 1, kind: input, shape index: {}]   ;;  %s710_s2 = inlined_call_operand.hbm [shape: f32[56,128], index: 2, kind: input, shape index: {}]   ;;  %s711_s3 = inlined_call_operand.vmem [shape: f32[1,128], index: 3, kind: input, shape index: {}]   ;;  %s712_s4 = inlined_call_operand.vmem [shape: f32[1,128], index: 4, kind: input, shape index: {}]   ;;  %s713_s5 = inlined_call_operand.vmem [shape: f32[1,128], index: 5, kind: output, shape index: {}]  }
   0x1   :  { %s17_s20 = sshll.u32 %s709_s1, 4  ;;  %s18_s20 = int_to_ptr.hbm [resolvable:$true] %s17_s20 }
   0x2   :  { %12 = vsyncpa [#allocation7], 0  ;;  %s505_s21 = smov [#allocation4]   ;;  %s30_s25 = sshll.u32 %s710_s2, 4  ;;  %s31_s25 = int_to_ptr.hbm [resolvable:$true] %s30_s25 }
   0x3   :  { %s19_s22 = sshll.u32 %s505_s21, 4  ;;  %s506_s26 = smov 128   ;;  %s20_s22 = int_to_ptr.vmem [resolvable:$true] %s19_s22 }
   0x4   :  { %s507_s27 = smov 8   ;;  %s508_s28 = smov [#allocation6]  }
   0x5   :  { %25 = dma.hbm_to_vmem [thread:$0]  %s18_s20, 896, %s20_s22, [#allocation5], %s506_s26, %s506_s26, %s507_s27  }
   0x6   :  { %s32_s29 = sshll.u32 %s508_s28, 4  ;;  %s33_s29 = int_to_ptr.vmem [resolvable:$true] %s32_s29 }
   0x7   :  { %38 = dma.hbm_to_vmem [thread:$0]  %s31_s25, 896, %s33_s29, [#allocation7], %s506_s26, %s506_s26, %s507_s27  }
   0x8   :  { %501 = dma.done.wait [#allocation5], 896  }
   0x9   :  { %502 = vsyncadd [#allocation5], 4294966400 }
   0xa   :  { %503 = dma.done.wait [#allocation7], 896  }
   0xb   :  { %504 = vsyncadd [#allocation7], 4294966400  ;;  %v261_v0 = vlaneseq  ;;  %v549_v1 = vld [vmem:[%s711_s3] sm:$0x1]  ;;  %v263_v5 = vstv %s708_s0  ;;  %v560_v8 = vld [vmem:[#allocation6] sm:$0xff]  ;;  %vm273_vm2 = vcmask 1040384   ;;  %s52_s9 = scvt.s32.f32 %s708_s0 }
   0xc   :  { %v260_v2 = vld [vmem:[%s712_s4] sm:$0x1]  ;;  %v564_v10 = vld [vmem:[#allocation6 + $0x10] sm:$0xff]  ;;  %v566_v11 = vld [vmem:[#allocation6 + $0x18] sm:$0xff]  ;;  %v90_v18 = vand.u32 2147483647, %v560_v8 }
   0xd   :  { %v554_v3 = vand.u32 127, %v261_v0  ;;  %v265_v4 = vsub.f32 %v549_v1, %v260_v2  ;;  %v562_v9 = vld [vmem:[#allocation6 + $0x8] sm:$0xff]  ;;  %v573_v15 = vld [vmem:[#allocation6 + $0x20] sm:$0xff]  ;;  %v577_v17 = vld [vmem:[#allocation6 + $0x30] sm:$0xff]  ;;  %v92_v21 = vand.u32 2147483647, %v564_v10 }
   0xe   :  { %v575_v16 = vld [vmem:[#allocation6 + $0x28] sm:$0xff]  ;;  %v91_v20 = vand.u32 2147483647, %v562_v9  ;;  %v93_v22 = vand.u32 2147483647, %v566_v11  ;;  %v97_v26 = vsub.f32 0.0, %v90_v18 }
   0xf   :  { %v266_v6 = vand.u32 2147483647, %v265_v4  ;;  %v268_v7 = vmul.f32 0.5, %v265_v4  ;;  %vm569_vm0 = vcmp.lt.s32.totalorder %v554_v3, %v263_v5  ;;  %v94_v24 = vand.u32 2147483647, %v573_v15  ;;  %v69_v41 = vld [vmem:[#allocation4] sm:$0xff] }
  0x10   :  { %v95_v25 = vand.u32 2147483647, %v575_v16  ;;  %v96_v28 = vand.u32 2147483647, %v577_v17  ;;  %v98_v29 = vsub.f32 0.0, %v91_v20  ;;  %v99_v30 = vsub.f32 0.0, %v92_v21 }
  0x11   :  { %vm267_vm1 = vcmp.lt.f32.partialorder %v266_v6, 1.0  ;;  %v269_v13 = vmul.f32 %v268_v7, %v265_v4  ;;  %v380_v14 = vadd.f32 -0.5, %v266_v6  ;;  %v100_v31 = vsub.f32 0.0, %v93_v22  ;;  %v70_v44 = vld [vmem:[#allocation4 + $0x8] sm:$0xff]  ;;  %v71_v45 = vld [vmem:[#allocation4 + $0x10] sm:$0xff]  ;;  %v72_v46 = vld [vmem:[#allocation4 + $0x18] sm:$0xff] }
  0x12   :  { %v101_v32 = vsub.f32 0.0, %v94_v24  ;;  %v102_v33 = vsub.f32 0.0, %v95_v25  ;;  %v104_v34 = vmul.f32 1.442695, %v97_v26  ;;  %v285_v35 = vsel %vm569_vm0, %v549_v1, 0.0  ;;  %v73_v49 = vld [vmem:[#allocation4 + $0x20] sm:$0xff] }
  0x13   :  { %v271_v19 = vsel %vm267_vm1, %v269_v13, %v380_v14  ;;  %v106_v36 = vmul.f32 1.442695, %v98_v29  ;;  %v108_v37 = vmul.f32 1.442695, %v99_v30  ;;  %v103_v38 = vsub.f32 0.0, %v96_v28  ;;  %v74_v58 = vld [vmem:[#allocation4 + $0x28] sm:$0xff] }
  0x14   :  { %v272_v23 = vsel %vm569_vm0, %v271_v19, 0.0  ;;  %403 = vpow2.f32 %v104_v34  ;;  %v110_v39 = vmul.f32 1.442695, %v100_v31  ;;  %v112_v40 = vmul.f32 1.442695, %v101_v32  ;;  %s381_s22 = sadd.f32 -1.0, %s52_s9 }
  0x15   :  { %v274_v27 = vsel %vm273_vm2, %v272_v23, 0.0  ;;  %405 = vpow2.f32 %v106_v36  ;;  %v114_v42 = vmul.f32 1.442695, %v102_v33  ;;  %v286_v43 = vsel %vm273_vm2, %v285_v35, 0.0 }
  0x16   :  { %275 = vadd.xlane.f32.xlu0 %v274_v27  ;;  %407 = vpow2.f32 %v108_v37  ;;  %v83_v47 = vmax.f32 %v560_v8, 0.0  ;;  %v84_v48 = vmax.f32 %v562_v9, 0.0  ;;  %v85_v50 = vmax.f32 %v564_v10, 0.0 }
  0x17   :  { %409 = vpow2.f32 %v110_v39  ;;  %v116_v51 = vmul.f32 1.442695, %v103_v38  ;;  %v596_v52 = vmul.f32 %v69_v41, %v69_v41  ;;  %v86_v53 = vmax.f32 %v566_v11, 0.0 }
  0x18   :  { %411 = vpow2.f32 %v112_v40  ;;  %v87_v54 = vmax.f32 %v573_v15, 0.0  ;;  %v88_v55 = vmax.f32 %v575_v16, 0.0  ;;  %v89_v56 = vmax.f32 %v577_v17, 0.0 }
  0x19   :  { %413 = vpow2.f32 %v114_v42  ;;  %v602_v59 = vmul.f32 %v70_v44, %v70_v44  ;;  %v604_v60 = vmul.f32 %v71_v45, %v71_v45  ;;  %v606_v61 = vmul.f32 %v72_v46, %v72_v46 }
  0x1a   :  { %v404_v57 = vpop.eup %403  ;;  %v608_v4 = vmul.f32 %v73_v49, %v73_v49  ;;  %415 = vpow2.f32 %v116_v51  ;;  %v610_v20 = vmul.f32 %v74_v58, %v74_v58 }
  0x1b   :  { %v406_v62 = vpop.eup %405  ;;  %v118_v63 = vadd.f32 1.0, %v404_v57  ;;  %v121_v0 = vmul.f32 -0.5, %v404_v57  ;;  %v124_v2 = vand.u32 2147483647, %v404_v57 }
  0x1c   :  { %v408_v5 = vpop.eup %407  ;;  %v127_v6 = vadd.f32 1.0, %v406_v62  ;;  %v130_v7 = vmul.f32 -0.5, %v406_v62  ;;  %v133_v13 = vand.u32 2147483647, %v406_v62 }
  0x1d   :  { %v410_v14 = vpop.eup %409  ;;  %417 = vlog2.f32 %v118_v63  ;;  %v122_v18 = vadd.f32 1.0, %v121_v0  ;;  %v136_v19 = vadd.f32 1.0, %v408_v5  ;;  %vm612_vm3 = vcmp.lt.f32.partialorder %v124_v2, 0.0004427343 }
  0x1e   :  { %287 = vadd.xlane.f32.xlu0 %v286_v43  ;;  %v412_v21 = vpop.eup %411  ;;  %419 = vlog2.f32 %v127_v6  ;;  %v131_v23 = vadd.f32 1.0, %v130_v7  ;;  %v139_v24 = vmul.f32 -0.5, %v408_v5  ;;  %vm616_vm4 = vcmp.lt.f32.partialorder %v133_v13, 0.0004427343 }
  0x1f   :  { %421 = vlog2.f32 %v136_v19  ;;  %v142_v26 = vand.u32 2147483647, %v408_v5  ;;  %v145_v27 = vadd.f32 1.0, %v410_v14  ;;  %v414_v28 = vpop.eup %413  ;;  %v123_v29 = vmul.f32 %v404_v57, %v122_v18 }
  0x20   :  { %v140_v30 = vadd.f32 1.0, %v139_v24  ;;  %v148_v31 = vmul.f32 -0.5, %v410_v14  ;;  %v151_v32 = vand.u32 2147483647, %v410_v14  ;;  %v132_v33 = vmul.f32 %v406_v62, %v131_v23  ;;  %v416_v36 = vpop.eup %415 }
  0x21   :  { %423 = vlog2.f32 %v145_v27  ;;  %v154_v34 = vadd.f32 1.0, %v412_v21  ;;  %v157_v35 = vmul.f32 -0.5, %v412_v21  ;;  %vm620_vm5 = vcmp.lt.f32.partialorder %v142_v26, 0.0004427343 }
  0x22   :  { %v141_v37 = vmul.f32 %v408_v5, %v140_v30  ;;  %v149_v39 = vadd.f32 1.0, %v148_v31  ;;  %v160_v40 = vand.u32 2147483647, %v412_v21  ;;  %v163_v43 = vadd.f32 1.0, %v414_v28 }
  0x23   :  { %v418_v41 = vpop.eup %417  ;;  %425 = vlog2.f32 %v154_v34  ;;  %v158_v42 = vadd.f32 1.0, %v157_v35  ;;  %v166_v44 = vmul.f32 -0.5, %v414_v28  ;;  %vm624_vm6 = vcmp.lt.f32.partialorder %v151_v32, 0.0004427343 }
  0x24   :  { %v420_v45 = vpop.eup %419  ;;  %v120_v46 = vmul.f32 0.6931472, %v418_v41  ;;  %v150_v49 = vmul.f32 %v410_v14, %v149_v39  ;;  %v169_v57 = vand.u32 2147483647, %v414_v28  ;;  %vm628_vm7 = vcmp.lt.f32.partialorder %v160_v40, 0.0004427343 }
  0x25   :  { %v422_v58 = vpop.eup %421  ;;  %v129_v62 = vmul.f32 0.6931472, %v420_v45  ;;  %427 = vlog2.f32 %v163_v43  ;;  %v167_v0 = vadd.f32 1.0, %v166_v44  ;;  %v159_v6 = vmul.f32 %v412_v21, %v158_v42 }
  0x26   :  { %v126_v2 = vsel %vm612_vm3, %v123_v29, %v120_v46  ;;  %v138_v5 = vmul.f32 0.6931472, %v422_v58  ;;  %v172_v7 = vadd.f32 1.0, %v416_v36  ;;  %vm636_vm8 = vcmp.lt.f32.partialorder %v169_v57, 0.0004427343 }
  0x27   :  { %v424_v13 = vpop.eup %423  ;;  %v135_v14 = vsel %vm616_vm4, %v132_v33, %v129_v62  ;;  %v168_v18 = vmul.f32 %v414_v28, %v167_v0  ;;  %v175_v23 = vmul.f32 -0.5, %v416_v36  ;;  %v181_v22 = vadd.f32 %v126_v2, %v83_v47 }
  0x28   :  { %v144_v24 = vsel %vm620_vm5, %v141_v37, %v138_v5  ;;  %v147_v26 = vmul.f32 0.6931472, %v424_v13  ;;  %429 = vlog2.f32 %v172_v7  ;;  %v178_v29 = vand.u32 2147483647, %v416_v36 }
  0x29   :  { %v426_v21 = vpop.eup %425  ;;  %v176_v27 = vadd.f32 1.0, %v175_v23  ;;  %v182_v25 = vadd.f32 %v135_v14, %v84_v48  ;;  %v183_v28 = vadd.f32 %v144_v24, %v85_v50  ;;  %v195_v32 = vmul.f32 %v181_v22, %v181_v22 }
  0x2a   :  { %v153_v30 = vsel %vm624_vm6, %v150_v49, %v147_v26  ;;  %v156_v31 = vmul.f32 0.6931472, %v426_v21  ;;  %431 = vlog2.f32 %v181_v22  ;;  %vm661_vm9 = vcmp.lt.f32.partialorder %v178_v29, 0.0004427343 }
  0x2b   :  { %v428_v33 = vpop.eup %427  ;;  %v177_v34 = vmul.f32 %v416_v36, %v176_v27  ;;  %v184_v8 = vadd.f32 %v153_v30, %v86_v53  ;;  %v196_v47 = vmul.f32 %v182_v25, %v182_v25  ;;  %v197_v35 = vmul.f32 %v183_v28, %v183_v28 }
  0x2c   :  { %v162_v9 = vsel %vm628_vm7, %v159_v6, %v156_v31  ;;  %v165_v48 = vmul.f32 0.6931472, %v428_v33  ;;  %v202_v10 = vadd.f32 %v195_v32, %v596_v52  ;;  %433 = vlog2.f32 %v182_v25  ;;  %v75_v52 = vld [vmem:[#allocation4 + $0x30] sm:$0xff] }
  0x2d   :  { %v185_v50 = vadd.f32 %v162_v9, %v87_v54  ;;  %v198_v37 = vmul.f32 %v184_v8, %v184_v8  ;;  %v203_v38 = vadd.f32 %v196_v47, %v602_v59  ;;  %v204_v36 = vadd.f32 %v197_v35, %v604_v60 }
  0x2e   :  { %v430_v39 = vpop.eup %429  ;;  %v171_v11 = vsel %vm636_vm8, %v168_v18, %v165_v48  ;;  %v373_v40 = vadd.f32 -1.0, %v202_v10  ;;  %435 = vlog2.f32 %v183_v28  ;;  %v53_v53 = vstv %s52_s9 }
  0x2f   :  { %v174_v41 = vmul.f32 0.6931472, %v430_v39  ;;  %v186_v15 = vadd.f32 %v171_v11, %v88_v55  ;;  %v199_v54 = vmul.f32 %v185_v50, %v185_v50  ;;  %v205_v59 = vadd.f32 %v198_v37, %v606_v61 }
  0x30   :  { %v432_v42 = vpop.eup %431  ;;  %v374_v60 = vadd.f32 -1.0, %v203_v38  ;;  %v375_v43 = vadd.f32 -1.0, %v204_v36  ;;  %v216_v44 = vmul.f32 0.5, %v373_v40  ;;  %437 = vlog2.f32 %v184_v8 }
  0x31   :  { %v180_v45 = vsel %vm661_vm9, %v177_v34, %v174_v41  ;;  %v200_v46 = vmul.f32 %v186_v15, %v186_v15  ;;  %v206_v49 = vadd.f32 %v199_v54, %v608_v4  ;;  %v376_v51 = vadd.f32 -1.0, %v205_v59 }
  0x32   :  { %v434_v57 = vpop.eup %433  ;;  %v187_v16 = vadd.f32 %v180_v45, %v89_v56  ;;  %v194_v55 = vmul.f32 %v75_v52, %v75_v52  ;;  %v217_v58 = vmul.f32 0.5, %v374_v60  ;;  %v224_v62 = vmul.f32 0.6931472, %v432_v42 }
  0x33   :  { %v207_v61 = vadd.f32 %v200_v46, %v610_v20  ;;  %v218_v63 = vmul.f32 0.5, %v375_v43  ;;  %v226_v0 = vmul.f32 0.6931472, %v434_v57  ;;  %439 = vlog2.f32 %v185_v50 }
  0x34   :  { %v436_v2 = vpop.eup %435  ;;  %v201_v5 = vmul.f32 %v187_v16, %v187_v16  ;;  %v237_v6 = vsub.f32 %v216_v44, %v224_v62  ;;  %v377_v7 = vadd.f32 -1.0, %v206_v49  ;;  %v219_v13 = vmul.f32 0.5, %v376_v51 }
  0x35   :  { %v228_v14 = vmul.f32 0.6931472, %v436_v2  ;;  %441 = vlog2.f32 %v186_v15  ;;  %v378_v19 = vadd.f32 -1.0, %v207_v61  ;;  %v238_v17 = vsub.f32 %v217_v58, %v226_v0 }
  0x36   :  { %v438_v4 = vpop.eup %437  ;;  %v208_v18 = vadd.f32 %v201_v5, %v194_v55  ;;  %443 = vlog2.f32 %v187_v16  ;;  %v220_v20 = vmul.f32 0.5, %v377_v7  ;;  %v65_v54 = vand.u32 2147483648, %v53_v53 }
  0x37   :  { %v230_v56 = vmul.f32 0.6931472, %v438_v4  ;;  %v239_v23 = vsub.f32 %v218_v63, %v228_v14  ;;  %v244_v26 = vadd.f32 %v238_v17, %v237_v6  ;;  %v221_v27 = vmul.f32 0.5, %v378_v19 }
  0x38   :  { %v379_v24 = vadd.f32 -1.0, %v208_v18  ;;  %445 = vrcp.f32 %v53_v53  ;;  %vm59_vm10 = vweird.f32 %v53_v53  ;;  %v63_v42 = vand.u32 2147483647, %v53_v53 }
  0x39   :  { %v240_v22 = vsub.f32 %v219_v13, %v230_v56  ;;  %v440_v21 = vpop.eup %439  ;;  %v245_v29 = vadd.f32 %v244_v26, %v239_v23  ;;  %v66_v60 = vor.u32 1.1754944e-38, %v65_v54  ;;  %v312_v19 = vstv %s381_s22 }
  0x3a   :  { %v222_v28 = vmul.f32 0.5, %v379_v24  ;;  %v232_v30 = vmul.f32 0.6931472, %v440_v21  ;;  %vm64_vm13 = vcmp.eq.f32.partialorder %v63_v42, 8.507059e+37  ;;  %447 = vrcp.f32 %v312_v19 }
  0x3b   :  { %v442_v25 = vpop.eup %441  ;;  %v246_v33 = vadd.f32 %v245_v29, %v240_v22  ;;  %v509_v17 = vmov 0.5   ;;  %vm318_vm14 = vweird.f32 %v312_v19  ;;  %v324_v29 = vand.u32 2147483648, %v312_v19 }
  0x3c   :  { %v444_v31 = vpop.eup %443  ;;  %v234_v32 = vmul.f32 0.6931472, %v442_v25  ;;  %v241_v8 = vsub.f32 %v220_v20, %v232_v30  ;;  %449 = vrcp.f32 %v509_v17  ;;  %vm350_vm3 = vcmp.eq.s32.totalorder %v554_v3, 1 }
  0x3d   :  { %v236_v34 = vmul.f32 0.6931472, %v444_v31  ;;  %vm347_vm4 = vcmp.eq.s32.totalorder %v554_v3, 0  ;;  %vm354_vm5 = vcmp.eq.s32.totalorder %v554_v3, 2  ;;  %vm358_vm6 = vcmp.eq.s32.totalorder %v554_v3, 3 }
  0x3e   :  { %v242_v47 = vsub.f32 %v221_v27, %v234_v32  ;;  %v247_v9 = vadd.f32 %v246_v33, %v241_v8  ;;  %v446_v40 = vpop.eup %445  ;;  %v325_v33 = vor.u32 1.1754944e-38, %v324_v29  ;;  %vm362_vm7 = vcmp.eq.s32.totalorder %v554_v3, 4 }
  0x3f   :  { %v243_v35 = vsub.f32 %v222_v28, %v236_v34  ;;  %v55_v52 = vmul.f32 %v446_v40, %v53_v53  ;;  %vm60_vm11 = vweird.f32 %v446_v40  ;;  %v322_v28 = vand.u32 2147483647, %v312_v19 }
  0x40   :  { %v248_v48 = vadd.f32 %v247_v9, %v242_v47  ;;  %vm61_vm12 = vmor %vm59_vm10, %vm60_vm11  ;;  %v448_v56 = vpop.eup %447 }
  0x41   :  { %v56_v41 = vsub.f32 1.0, %v55_v52  ;;  %v314_v23 = vmul.f32 %v448_v56, %v312_v19  ;;  %vm319_vm15 = vweird.f32 %v448_v56  ;;  %vm323_vm1 = vcmp.eq.f32.partialorder %v322_v28, 8.507059e+37 }
  0x42   :  { %v249_v10 = vadd.f32 %v248_v48, %v243_v35  ;;  %v450_v24 = vpop.eup %449 }
  0x43   :  { %v57_v15 = vmul.f32 %v446_v40, %v56_v41  ;;  %v331_v26 = vmul.f32 0.5, %v450_v24 }
  0x44   :  { %v250_v50 = vrot.slane %v249_v10, 4 }
  0x45   :  { %v58_v59 = vadd.f32 %v446_v40, %v57_v15  ;;  %v332_v22 = vsub.f32 1.0, %v331_v26 }
  0x46   :  { %v251_v37 = vadd.f32 %v250_v50, %v249_v10 }
  0x47   :  { %v62_v43 = vsel %vm61_vm12, %v446_v40, %v58_v59  ;;  %v333_v30 = vmul.f32 %v450_v24, %v332_v22 }
  0x48   :  { %v252_v38 = vrot.slane %v251_v37, 2  ;;  %v67_v45 = vsel %vm64_vm13, %v66_v60, %v62_v43 }
  0x49   :  { %382 = vpush %v67_v45  ;;  %v334_v8 = vadd.f32 %v450_v24, %v333_v30 }
  0x4a   :  { %v253_v36 = vadd.f32 %v252_v38, %v251_v37 }
  0x4c   :  { %v254_v39 = vrot.slane %v253_v36, 1 }
  0x4e   :  { %v255_v11 = vadd.f32 %v254_v39, %v253_v36 }
  0x50   :  { %256 = vadd.xlane.f32.xlu1 %v255_v11 }
  0x7a   :  { %s383_s12 = spop %382 }
  0x89   :  { %v276_v44 = vpop.xlane.xlu0 %275 }
  0x8a   :  { %v277_v49 = vrot.slane %v276_v44, 4 }
  0x8c   :  { %v278_v57 = vadd.f32 %v277_v49, %v276_v44 }
  0x8e   :  { %v279_v55 = vrot.slane %v278_v57, 2 }
  0x90   :  { %v280_v62 = vadd.f32 %v279_v55, %v278_v57 }
  0x91   :  { %v288_v46 = vpop.xlane.xlu0 %287 }
  0x92   :  { %v289_v51 = vrot.slane %v288_v46, 4  ;;  %v281_v63 = vrot.slane %v280_v62, 1 }
  0x94   :  { %v290_v16 = vadd.f32 %v289_v51, %v288_v46  ;;  %v282_v5 = vadd.f32 %v281_v63, %v280_v62 }
  0x96   :  { %v291_v58 = vrot.slane %v290_v16, 2 }
  0x98   :  { %v292_v61 = vadd.f32 %v291_v58, %v290_v16 }
  0x9a   :  { %v293_v0 = vrot.slane %v292_v61, 1 }
  0x9c   :  { %v294_v6 = vadd.f32 %v293_v0, %v292_v61 }
  0xc3   :  { %v257_v2 = vpop.xlane.xlu1 %256 }
  0xc4   :  { %384 = vpush %v257_v2 }
  0xc5   :  { %386 = vpush %v282_v5 }
  0xc6   :  { %388 = vpush %v294_v6 }
  0xf5   :  { %s681_s13 = spop %384 }
  0xf6   :  { %s343_s14 = smul.f32 0.01, %s681_s13  ;;  %s387_s15 = spop %386  ;;  %v355_v36 = vstv %s681_s13 }
  0xf7   :  { %s684_s16 = smul.f32 %s387_s15, %s383_s12  ;;  %s389_s17 = spop %388  ;;  %v356_v41 = vsel %vm354_vm5, %v355_v36, 0.0 }
  0xf8   :  { %s296_s18 = smul.f32 %s389_s17, %s383_s12 }
  0xf9   :  { %s687_s19 = sadd.f32 %s343_s14, %s684_s16  ;;  %v351_v38 = vstv %s684_s16 }
  0xfa   :  { %v297_v7 = vstv %s296_s18  ;;  %v352_v11 = vsel %vm350_vm3, %v351_v38, 0.0 }
  0xfb   :  { %v298_v13 = vsub.f32 %v549_v1, %v297_v7  ;;  %v315_v1 = vsub.f32 1.0, %v314_v23 }
  0xfd   :  { %v299_v14 = vmul.f32 %v298_v13, %v298_v13  ;;  %v316_v12 = vmul.f32 %v448_v56, %v315_v1 }
  0xff   :  { %v300_v4 = vsel %vm569_vm0, %v299_v14, 0.0  ;;  %v317_v25 = vadd.f32 %v448_v56, %v316_v12  ;;  %vm320_vm0 = vmor %vm318_vm14, %vm319_vm15 }
 0x100   :  { %v301_v18 = vsel %vm273_vm2, %v300_v4, 0.0  ;;  %vm335_vm2 = vweird.f32 %v450_v24 }
 0x101   :  { %302 = vadd.xlane.f32.xlu1 %v301_v18  ;;  %v321_v34 = vsel %vm320_vm0, %v448_v56, %v317_v25  ;;  %v336_v48 = vsel %vm335_vm2, %v450_v24, %v334_v8 }
 0x102   :  { %v326_v9 = vsel %vm323_vm1, %v325_v33, %v321_v34 }
 0x174   :  { %v303_v20 = vpop.xlane.xlu1 %302 }
 0x175   :  { %v304_v21 = vrot.slane %v303_v20, 4 }
 0x177   :  { %v305_v27 = vadd.f32 %v304_v21, %v303_v20 }
 0x179   :  { %v306_v31 = vrot.slane %v305_v27, 2 }
 0x17b   :  { %v307_v32 = vadd.f32 %v306_v31, %v305_v27 }
 0x17d   :  { %v308_v47 = vrot.slane %v307_v32, 1 }
 0x17f   :  { %v309_v35 = vadd.f32 %v308_v47, %v307_v32 }
 0x181   :  { %390 = vpush %v309_v35 }
 0x182   :  { %392 = vpush %v326_v9 }
 0x183   :  { %394 = vpush %v336_v48 }
 0x1b2   :  { %s391_s0 = spop %390 }
 0x1b3   :  { %s393_s23 = spop %392 }
 0x1b4   :  { %s328_s24 = smul.f32 %s393_s23, %s391_s0  ;;  %s395_s25 = spop %394 }
 0x1b6   :  { %s329_s26 = ssub.f32 0.0, %s328_s24  ;;  %v359_v40 = vstv %s328_s24 }
 0x1b7   :  { %v360_v59 = vsel %vm358_vm6, %v359_v40, 0.0 }
 0x1b8   :  { %s338_s27 = smul.f32 %s395_s25, %s329_s26 }
 0x1ba   :  { %v339_v10 = vstv %s338_s27 }
 0x1bb   :  { %v340_v50 = vmul.f32 1.442695, %v339_v10 }
 0x1bd   :  { %451 = vpow2.f32 %v340_v50 }
 0x1c3   :  { %v452_v37 = vpop.eup %451 }
 0x1c4   :  { %396 = vpush %v452_v37 }
 0x1f5   :  { %s397_s28 = spop %396 }
 0x1f6   :  { %s345_s29 = smul.f32 0.1, %s397_s28  ;;  %v363_v54 = vstv %s397_s28 }
 0x1f7   :  { %v364_v60 = vsel %vm362_vm7, %v363_v54, 0.0 }
 0x1f8   :  { %s346_s1 = sadd.f32 %s345_s29, %s687_s19 }
 0x1fa   :  { %v348_v39 = vstv %s346_s1 }
 0x1fb   :  { %v349_v53 = vsel %vm347_vm4, %v348_v39, 0.0 }
 0x1fc   :  { %v353_v52 = vadd.f32 %v352_v11, %v349_v53 }
 0x1fe   :  { %v357_v15 = vadd.f32 %v356_v41, %v353_v52 }
 0x200   :  { %v361_v42 = vadd.f32 %v360_v59, %v357_v15 }
 0x202   :  { %v365_v43 = vadd.f32 %v364_v60, %v361_v42 }
 0x204   :  { %366 = vst [vmem:[%s713_s5] sm:$0x1] %v365_v43 }
 0x205   :  { %371 = vsyncpa [#allocation5], 1 }
 0x206   :  { %372 = vsyncpa [#allocation7], 1 }

</bundles_post_ra>
